<compile_context>
chip_gen: v7x
topology: tpu7x:2x2x1
jax: 0.10.0
libtpu: 0.0.40
codegen_flags: <defaults>
</compile_context>

<pallas_src>
import math
from functools import partial, lru_cache

import jax
import jax.numpy as jnp
from jax.experimental import pallas as pl
from jax.experimental.pallas import tpu as pltpu

# ---------------------------------------------------------------------------
# configuration (torch reference values in comments)
# ---------------------------------------------------------------------------
MODEL_CH = 32            # torch: 320
TIME_DIM = MODEL_CH * 4  # torch: 1280
CONTEXT_DIM = 768
N_HEADS = 8
IN_CH = 4
OUT_CH = 4
GN_GROUPS = 32
EPS = 1e-5

ACT_DT = jnp.bfloat16    # activation / MXU operand dtype
DT_NAME = "bfloat16"

# bf16 matmul tile caps (v6e/v7x friendly, 128-multiples for v5e); even fully
# double-buffered these stay far below the 32 MiB scoped-VMEM default.
TM_MAX = 512
TN_MAX = 512
TK_MAX = 1024
COUT_TILE = 256          # conv output-channel tile cap


def _round_up(v, m):
    return ((v + m - 1) // m) * m


def _pad2(x, rows, cols):
    r, c = x.shape
    if r == rows and c == cols:
        return x
    return jnp.pad(x, ((0, rows - r), (0, cols - c)))


def _fit(dim, cap, align):
    """Pick a tile for `dim`: the full dim if it fits, else an aligned divisor,
    else (rare fallback) pad up to a multiple of `cap`."""
    if dim <= cap:
        return dim, dim
    t = (cap // align) * align
    while t >= align:
        if dim % t == 0:
            return t, dim
        t -= align
    return cap, _round_up(dim, cap)


# ---------------------------------------------------------------------------
# Pallas kernels
# ---------------------------------------------------------------------------
def _matmul_kernel(*refs, act, has_res):
    it = iter(refs)
    x_ref, w_ref, b_ref = next(it), next(it), next(it)
    res_ref = next(it) if has_res else None
    o_ref, acc_ref = next(it), next(it)

    @pl.when(pl.program_id(2) == 0)
    def _init():
        acc_ref[...] = jnp.zeros_like(acc_ref)

    acc_ref[...] += jnp.dot(x_ref[...], w_ref[...],
                            preferred_element_type=jnp.float32)

    @pl.when(pl.program_id(2) == pl.num_programs(2) - 1)
    def _finalize():
        y = acc_ref[...] + b_ref[...].astype(jnp.float32)
        if act == "silu":
            y = y * jax.nn.sigmoid(y)
        if has_res:
            y = y + res_ref[...].astype(jnp.float32)
        o_ref[...] = y.astype(o_ref.dtype)


def _geglu_kernel(x_ref, wa_ref, wg_ref, ba_ref, bg_ref, o_ref,
                  acca_ref, accg_ref):
    @pl.when(pl.program_id(2) == 0)
    def _init():
        acca_ref[...] = jnp.zeros_like(acca_ref)
        accg_ref[...] = jnp.zeros_like(accg_ref)

    x = x_ref[...]
    acca_ref[...] += jnp.dot(x, wa_ref[...], preferred_element_type=jnp.float32)
    accg_ref[...] += jnp.dot(x, wg_ref[...], preferred_element_type=jnp.float32)

    @pl.when(pl.program_id(2) == pl.num_programs(2) - 1)
    def _finalize():
        a = acca_ref[...] + ba_ref[...].astype(jnp.float32)
        g = accg_ref[...] + bg_ref[...].astype(jnp.float32)
        # tanh-approx GELU (EUP tanh slot).
        # TODO(synk): exact erf GELU once Mosaic erf lowering is confirmed.
        gelu_g = 0.5 * g * (1.0 + jnp.tanh(
            0.7978845608028654 * (g + 0.044715 * g * g * g)))
        o_ref[...] = (a * gelu_g).astype(o_ref.dtype)


def _conv3x3_kernel(*refs, H, W, pad_rows, has_sel, has_ch, has_res):
    # grid = (batch, Cout tile).  x block (1, H*W, Cin); w block (9, Cin, cot).
    it = iter(refs)
    x_ref, w_ref, b_ref, col_ref = next(it), next(it), next(it), next(it)
    sel_ref = next(it) if has_sel else None
    ch_ref = next(it) if has_ch else None
    res_ref = next(it) if has_res else None
    o_ref, xpad_ref, acc_ref = next(it), next(it), next(it)

    # stage the un-padded image into a zero-padded flat VMEM buffer; only once
    # per batch element (the Cout-tile axis is innermost / "arbitrary").
    @pl.when(pl.program_id(1) == 0)
    def _fill():
        xpad_ref[...] = jnp.zeros_like(xpad_ref)
        xpad_ref[pl.ds(pad_rows, H * W), :] = x_ref[0]

    xdt = xpad_ref.dtype
    col = col_ref[...]                                   # (H*W, 1) f32 col idx
    mask_l = (col != 0.0).astype(xdt)
    mask_r = (col != float(W - 1)).astype(xdt)

    # 9-tap accumulation: each tap is one sublane-offset slab of the padded
    # image feeding the MXU directly (no per-tap lane slices / reshapes);
    # horizontal wrap-around is masked on the VPU, vertical edges hit the
    # zero padding.  Accumulation is in-place in an f32 VMEM scratch.
    for t in range(9):
        oi, oj = t // 3 - 1, t % 3 - 1
        start = pad_rows + oi * W + oj
        slab = xpad_ref[pl.ds(start, H * W), :]
        if oj == -1:
            slab = slab * mask_l
        elif oj == 1:
            slab = slab * mask_r
        contrib = jnp.dot(slab, w_ref[t], preferred_element_type=jnp.float32)
        if t == 0:
            acc_ref[...] = contrib
        else:
            acc_ref[...] += contrib

    y = acc_ref[...]
    if has_sel:
        # stride-2 drain: pick the strided output rows with a one-hot matmul
        # (stays in VMEM; no im2col / no dense HBM round trip).
        y = jnp.dot(sel_ref[...], y, preferred_element_type=jnp.float32)
    y = y + b_ref[...].astype(jnp.float32)
    if has_ch:                         # fused broadcast time-embedding add
        y = y + ch_ref[0].astype(jnp.float32)
    if has_res:                        # fused residual / skip add
        y = y + res_ref[0].astype(jnp.float32)
    o_ref[0] = y.astype(o_ref.dtype)


def _groupnorm_kernel(x_ref, g_ref, b_ref, o_ref, *, groups, eps, act):
    # one grid step == one batch element; x block is (1, N, C); centered
    # two-pass statistics in f32.
    x = x_ref[0].astype(jnp.float32)               # (N, C)
    n, c = x.shape
    cpg = c // groups
    ch_i = jax.lax.broadcasted_iota(jnp.int32, (c, groups), 0)
    gr_i = jax.lax.broadcasted_iota(jnp.int32, (c, groups), 1)
    gm = jnp.where((ch_i >= gr_i * cpg) & (ch_i < (gr_i + 1) * cpg), 1.0, 0.0)
    ch_t = jax.lax.broadcasted_iota(jnp.int32, (groups, c), 1)
    gr_t = jax.lax.broadcasted_iota(jnp.int32, (groups, c), 0)
    gmt = jnp.where((ch_t >= gr_t * cpg) & (ch_t < (gr_t + 1) * cpg), 1.0, 0.0)

    cnt = float(n * cpg)
    s1 = jnp.sum(x, axis=0, keepdims=True)                      # (1, C)
    mean_g = jnp.dot(s1, gm, preferred_element_type=jnp.float32) / cnt
    mean_c = jnp.dot(mean_g, gmt, preferred_element_type=jnp.float32)
    xc = x - mean_c
    s2 = jnp.sum(xc * xc, axis=0, keepdims=True)
    var_g = jnp.dot(s2, gm, preferred_element_type=jnp.float32) / cnt
    inv_c = jnp.dot(jax.lax.rsqrt(var_g + eps), gmt,
                    preferred_element_type=jnp.float32)
    y = xc * inv_c * g_ref[...].astype(jnp.float32) \
        + b_ref[...].astype(jnp.float32)
    if act == "silu":
        y = y * jax.nn.sigmoid(y)
    o_ref[0] = y.astype(o_ref.dtype)


def _layernorm_kernel(x_ref, g_ref, b_ref, o_ref, *, eps):
    x = x_ref[0].astype(jnp.float32)               # (L, C)
    mean = jnp.mean(x, axis=-1, keepdims=True)
    xc = x - mean
    var = jnp.mean(xc * xc, axis=-1, keepdims=True)
    y = xc * jax.lax.rsqrt(var + eps)
    o_ref[0] = (y * g_ref[...].astype(jnp.float32)
                + b_ref[...].astype(jnp.float32)).astype(o_ref.dtype)


def _flash_attn_kernel(q_ref, k_ref, v_ref, o_ref, m_ref, l_ref, acc_ref, *,
                       scale):
    # grid = (B*heads, kv-tile); online softmax with f32 m/l/acc scratch.
    kv = pl.program_id(1)

    @pl.when(kv == 0)
    def _init():
        m_ref[...] = jnp.full_like(m_ref, -jnp.inf)
        l_ref[...] = jnp.zeros_like(l_ref)
        acc_ref[...] = jnp.zeros_like(acc_ref)

    q = q_ref[0]                                           # (Lq, D) bf16
    k = k_ref[0]                                           # (tk, D) bf16
    s = jax.lax.dot_general(q, k, (((1,), (1,)), ((), ())),
                            preferred_element_type=jnp.float32) * scale
    m_prev = m_ref[...]
    m_new = jnp.maximum(m_prev, jnp.max(s, axis=-1, keepdims=True))
    alpha = jnp.exp(m_prev - m_new)
    p = jnp.exp(s - m_new)
    l_ref[...] = alpha * l_ref[...] + jnp.sum(p, axis=-1, keepdims=True)
    acc_ref[...] = alpha * acc_ref[...] + jnp.dot(
        p.astype(v_ref.dtype), v_ref[0], preferred_element_type=jnp.float32)
    m_ref[...] = m_new

    @pl.when(kv == pl.num_programs(1) - 1)
    def _finalize():
        o_ref[0] = (acc_ref[...] *
                    pl.reciprocal(l_ref[...], approx=True)).astype(o_ref.dtype)


# ---------------------------------------------------------------------------
# cached pallas_call builders (one Mosaic kernel per distinct signature;
# callers are jitted at block level so glue fuses and executables are reused)
# ---------------------------------------------------------------------------
@lru_cache(maxsize=None)
def _matmul_call(Mp, Kp, Np, tm, tk, tn, act, has_res, dtype):
    in_specs = [pl.BlockSpec((tm, tk), lambda i, j, k: (i, k)),
                pl.BlockSpec((tk, tn), lambda i, j, k: (k, j)),
                pl.BlockSpec((1, tn), lambda i, j, k: (0, j))]
    if has_res:
        in_specs.append(pl.BlockSpec((tm, tn), lambda i, j, k: (i, j)))
    return pl.pallas_call(
        partial(_matmul_kernel, act=act, has_res=has_res),
        out_shape=jax.ShapeDtypeStruct((Mp, Np), jnp.dtype(dtype)),
        grid=(Mp // tm, Np // tn, Kp // tk),
        in_specs=in_specs,
        out_specs=pl.BlockSpec((tm, tn), lambda i, j, k: (i, j)),
        scratch_shapes=[pltpu.VMEM((tm, tn), jnp.float32)],
        compiler_params=pltpu.CompilerParams(
            dimension_semantics=("parallel", "parallel", "arbitrary")),
    )


@lru_cache(maxsize=None)
def _geglu_call(Mp, Kp, Np, tm, tk, tn, dtype):
    in_specs = [pl.BlockSpec((tm, tk), lambda i, j, k: (i, k)),
                pl.BlockSpec((tk, tn), lambda i, j, k: (k, j)),
                pl.BlockSpec((tk, tn), lambda i, j, k: (k, j)),
                pl.BlockSpec((1, tn), lambda i, j, k: (0, j)),
                pl.BlockSpec((1, tn), lambda i, j, k: (0, j))]
    return pl.pallas_call(
        _geglu_kernel,
        out_shape=jax.ShapeDtypeStruct((Mp, Np), jnp.dtype(dtype)),
        grid=(Mp // tm, Np // tn, Kp // tk),
        in_specs=in_specs,
        out_specs=pl.BlockSpec((tm, tn), lambda i, j, k: (i, j)),
        scratch_shapes=[pltpu.VMEM((tm, tn), jnp.float32),
                        pltpu.VMEM((tm, tn), jnp.float32)],
        compiler_params=pltpu.CompilerParams(
            dimension_semantics=("parallel", "parallel", "arbitrary")),
    )


@lru_cache(maxsize=None)
def _conv_call(B, H, W, Cin, Cout, Ho, Wo, cot, pad_rows, tot_rows,
               has_sel, has_ch, has_res, dtype):
    n_co = Cout // cot
    in_specs = [pl.BlockSpec((1, H * W, Cin), lambda b, co: (b, 0, 0)),
                pl.BlockSpec((9, Cin, cot), lambda b, co: (0, 0, co)),
                pl.BlockSpec((1, cot), lambda b, co: (0, co)),
                pl.BlockSpec((H * W, 1), lambda b, co: (0, 0))]
    if has_sel:
        in_specs.append(pl.BlockSpec((Ho * Wo, H * W), lambda b, co: (0, 0)))
    if has_ch:
        in_specs.append(pl.BlockSpec((1, 1, cot), lambda b, co: (b, 0, co)))
    if has_res:
        in_specs.append(pl.BlockSpec((1, Ho * Wo, cot), lambda b, co: (b, 0, co)))
    return pl.pallas_call(
        partial(_conv3x3_kernel, H=H, W=W, pad_rows=pad_rows,
                has_sel=has_sel, has_ch=has_ch, has_res=has_res),
        out_shape=jax.ShapeDtypeStruct((B, Ho * Wo, Cout), jnp.dtype(dtype)),
        grid=(B, n_co),
        in_specs=in_specs,
        out_specs=pl.BlockSpec((1, Ho * Wo, cot), lambda b, co: (b, 0, co)),
        scratch_shapes=[pltpu.VMEM((tot_rows, Cin), jnp.dtype(dtype)),
                        pltpu.VMEM((H * W, cot), jnp.float32)],
        compiler_params=pltpu.CompilerParams(
            dimension_semantics=("parallel", "arbitrary")),
    )


@lru_cache(maxsize=None)
def _gn_call(B, N, C, G, act, dtype):
    return pl.pallas_call(
        partial(_groupnorm_kernel, groups=G, eps=EPS, act=act),
        out_shape=jax.ShapeDtypeStruct((B, N, C), jnp.dtype(dtype)),
        grid=(B,),
        in_specs=[pl.BlockSpec((1, N, C), lambda i: (i, 0, 0)),
                  pl.BlockSpec((1, C), lambda i: (0, 0)),
                  pl.BlockSpec((1, C), lambda i: (0, 0))],
        out_specs=pl.BlockSpec((1, N, C), lambda i: (i, 0, 0)),
        compiler_params=pltpu.CompilerParams(dimension_semantics=("parallel",)),
    )


@lru_cache(maxsize=None)
def _ln_call(B, L, C, dtype):
    return pl.pallas_call(
        partial(_layernorm_kernel, eps=EPS),
        out_shape=jax.ShapeDtypeStruct((B, L, C), jnp.dtype(dtype)),
        grid=(B,),
        in_specs=[pl.BlockSpec((1, L, C), lambda i: (i, 0, 0)),
                  pl.BlockSpec((1, C), lambda i: (0, 0)),
                  pl.BlockSpec((1, C), lambda i: (0, 0))],
        out_specs=pl.BlockSpec((1, L, C), lambda i: (i, 0, 0)),
        compiler_params=pltpu.CompilerParams(dimension_semantics=("parallel",)),
    )


@lru_cache(maxsize=None)
def _flash_call(BH, Lq, Lk, D, tk, scale, dtype):
    return pl.pallas_call(
        partial(_flash_attn_kernel, scale=scale),
        out_shape=jax.ShapeDtypeStruct((BH, Lq, D), jnp.dtype(dtype)),
        grid=(BH, Lk // tk),
        in_specs=[pl.BlockSpec((1, Lq, D), lambda b, kv: (b, 0, 0)),
                  pl.BlockSpec((1, tk, D), lambda b, kv: (b, kv, 0)),
                  pl.BlockSpec((1, tk, D), lambda b, kv: (b, kv, 0))],
        out_specs=pl.BlockSpec((1, Lq, D), lambda b, kv: (b, 0, 0)),
        scratch_shapes=[pltpu.VMEM((Lq, 1), jnp.float32),
                        pltpu.VMEM((Lq, 1), jnp.float32),
                        pltpu.VMEM((Lq, D), jnp.float32)],
        compiler_params=pltpu.CompilerParams(
            dimension_semantics=("parallel", "arbitrary")),
    )


# ---------------------------------------------------------------------------
# thin wrappers
# ---------------------------------------------------------------------------
def pallas_matmul(x, w, b=None, act="none", residual=None):
    M, K = x.shape
    N = w.shape[1]
    x = x.astype(ACT_DT)
    w = w.astype(ACT_DT)
    if b is None:
        b = jnp.zeros((N,), jnp.float32)
    tm, Mp = _fit(M, TM_MAX, 8)
    tn, Np = _fit(N, TN_MAX, 128)
    tk, Kp = _fit(K, TK_MAX, 128)
    args = [_pad2(x, Mp, Kp), _pad2(w, Kp, Np),
            _pad2(b.astype(jnp.float32).reshape(1, N), 1, Np)]
    if residual is not None:
        args.append(_pad2(residual.astype(ACT_DT), Mp, Np))
    out = _matmul_call(Mp, Kp, Np, tm, tk, tn, act, residual is not None,
                       DT_NAME)(*args)
    if Mp != M or Np != N:
        out = out[:M, :N]
    return out


def pallas_geglu(x, wa, wg, ba, bg):
    M, K = x.shape
    N = wa.shape[1]
    x = x.astype(ACT_DT)
    tm, Mp = _fit(M, TM_MAX, 8)
    tn, Np = _fit(N, TN_MAX, 128)
    tk, Kp = _fit(K, TK_MAX, 128)
    args = [_pad2(x, Mp, Kp),
            _pad2(wa.astype(ACT_DT), Kp, Np),
            _pad2(wg.astype(ACT_DT), Kp, Np),
            _pad2(ba.astype(jnp.float32).reshape(1, N), 1, Np),
            _pad2(bg.astype(jnp.float32).reshape(1, N), 1, Np)]
    out = _geglu_call(Mp, Kp, Np, tm, tk, tn, DT_NAME)(*args)
    if Mp != M or Np != N:
        out = out[:M, :N]
    return out


def conv3x3(x, w9, b, *, stride=1, chadd=None, residual=None):
    """3x3 conv, padding=1.  x: (B,H,W,Cin); w9: (9,Cin,Cout); b: (Cout,)."""
    B, H, W, Cin = x.shape
    Cout = w9.shape[-1]
    if stride == 1:
        Ho, Wo = H, W
    else:
        Ho, Wo = (H - 1) // stride + 1, (W - 1) // stride + 1
    pad_rows = _round_up(W + 1, 8)
    tot_rows = _round_up(pad_rows + H * W + W + 1, 8)
    cot = Cout if Cout <= COUT_TILE else (128 if Cout % 128 == 0 else Cout)

    x2 = x.reshape(B, H * W, Cin).astype(ACT_DT)
    col = jnp.broadcast_to(jnp.arange(W, dtype=jnp.float32)[None, :],
                           (H, W)).reshape(H * W, 1)
    args = [x2, w9.astype(ACT_DT),
            b.astype(jnp.float32).reshape(1, Cout), col]
    has_sel = stride != 1
    if has_sel:
        rows = jnp.arange(Ho * Wo, dtype=jnp.int32)
        src = stride * (rows // Wo) * W + stride * (rows % Wo)
        sel = (src[:, None] ==
               jnp.arange(H * W, dtype=jnp.int32)[None, :]).astype(jnp.float32)
        args.append(sel)
    if chadd is not None:
        args.append(chadd.reshape(B, 1, Cout).astype(jnp.float32))
    if residual is not None:
        args.append(residual.reshape(B, Ho * Wo, Cout).astype(ACT_DT))
    out = _conv_call(B, H, W, Cin, Cout, Ho, Wo, cot, pad_rows, tot_rows,
                     has_sel, chadd is not None, residual is not None,
                     DT_NAME)(*args)
    return out.reshape(B, Ho, Wo, Cout)


def conv1x1(x, p):
    B, H, W, Cin = x.shape
    Cout = p["w"].shape[-1]
    y = pallas_matmul(x.reshape(B * H * W, Cin), p["w"], p["b"])
    return y.reshape(B, H, W, Cout)


def groupnorm(x_bnc, p, act="none", groups=GN_GROUPS):
    B, N, C = x_bnc.shape
    return _gn_call(B, N, C, groups, act, DT_NAME)(
        x_bnc.astype(ACT_DT), p["g"].reshape(1, C), p["b"].reshape(1, C))


def layernorm(x, p):
    B, L, C = x.shape
    return _ln_call(B, L, C, DT_NAME)(
        x.astype(ACT_DT), p["g"].reshape(1, C), p["b"].reshape(1, C))


def flash_attention(q, k, v, heads, scale):
    # q: (B, Lq, inner); k, v: (B, Lk, inner).  Head split/merge is one XLA
    # transpose inside the jitted block so the kernel stays lane-clean.
    B, Lq, inner = q.shape
    Lk = k.shape[1]
    D = inner // heads

    def split(t, L):
        return t.reshape(B, L, heads, D).transpose(0, 2, 1, 3).reshape(
            B * heads, L, D)

    qh, kh, vh = split(q, Lq), split(k, Lk), split(v, Lk)
    if Lk <= 512:
        tk = Lk
    elif Lk % 512 == 0:
        tk = 512
    elif Lk % 128 == 0:
        tk = 128
    else:
        tk = Lk
    o = _flash_call(B * heads, Lq, Lk, D, tk, float(scale), DT_NAME)(qh, kh, vh)
    return o.reshape(B, heads, Lq, D).transpose(0, 2, 1, 3).reshape(B, Lq, inner)


# ---------------------------------------------------------------------------
# parameter initialization (deterministic, array-only pytree leaves)
# ---------------------------------------------------------------------------
class ParamGen:
    def __init__(self, key):
        self.key = key

    def normal(self, shape, scale=1.0):
        self.key, sub = jax.random.split(self.key)
        return jax.random.normal(sub, shape, dtype=jnp.float32) * scale


def init_linear(pg, din, dout):
    return {"w": pg.normal((din, dout), din ** -0.5).astype(ACT_DT),
            "b": jnp.zeros((dout,), jnp.float32)}


def init_conv3(pg, cin, cout):
    return {"w": pg.normal((9, cin, cout), (cin * 9) ** -0.5).astype(ACT_DT),
            "b": jnp.zeros((cout,), jnp.float32)}


def init_conv1(pg, cin, cout):
    return {"w": pg.normal((cin, cout), cin ** -0.5).astype(ACT_DT),
            "b": jnp.zeros((cout,), jnp.float32)}


def init_norm(c):
    return {"g": jnp.ones((c,), jnp.float32), "b": jnp.zeros((c,), jnp.float32)}


def init_resblock(pg, cin, cout):
    return {"gn1": init_norm(cin),
            "conv1": init_conv3(pg, cin, cout),
            "emb": init_linear(pg, TIME_DIM, cout),
            "gn2": init_norm(cout),
            "conv2": init_conv3(pg, cout, cout),  # zero_module in torch (random here)
            "skip": None if cin == cout else init_conv1(pg, cin, cout)}


def init_attn(pg, qdim, cdim, heads, d_head):
    inner = heads * d_head
    return {"wq": pg.normal((qdim, inner), qdim ** -0.5).astype(ACT_DT),
            "wk": pg.normal((cdim, inner), cdim ** -0.5).astype(ACT_DT),
            "wv": pg.normal((cdim, inner), cdim ** -0.5).astype(ACT_DT),
            "wo": pg.normal((inner, qdim), inner ** -0.5).astype(ACT_DT),
            "bo": jnp.zeros((qdim,), jnp.float32)}


def init_basic_block(pg, dim, heads, d_head, cdim):
    inner_ff = dim * 4
    return {"norm1": init_norm(dim), "norm2": init_norm(dim), "norm3": init_norm(dim),
            "attn1": init_attn(pg, dim, dim, heads, d_head),
            "attn2": init_attn(pg, dim, cdim, heads, d_head),
            # GEGLU projection split into a-path / gate-path weights
            "ff_wa": pg.normal((dim, inner_ff), dim ** -0.5).astype(ACT_DT),
            "ff_wg": pg.normal((dim, inner_ff), dim ** -0.5).astype(ACT_DT),
            "ff_ba": jnp.zeros((inner_ff,), jnp.float32),
            "ff_bg": jnp.zeros((inner_ff,), jnp.float32),
            "ff_out": init_linear(pg, inner_ff, dim)}


def init_spatial_transformer(pg, ch, heads, d_head, cdim, depth=1):
    inner = heads * d_head
    return {"gn": init_norm(ch),
            "proj_in": init_conv1(pg, ch, inner),
            "blocks": [init_basic_block(pg, inner, heads, d_head, cdim)
                       for _ in range(depth)],
            "proj_out": init_conv1(pg, inner, ch)}  # zero_module in torch


def init_unet(pg):
    c1, c2, c3 = MODEL_CH, MODEL_CH * 2, MODEL_CH * 4

    def res(ci, co): return {"res": init_resblock(pg, ci, co)}
    def st(ch): return {"st": init_spatial_transformer(pg, ch, N_HEADS, ch // N_HEADS, CONTEXT_DIM)}
    def conv(ci, co): return {"conv": init_conv3(pg, ci, co)}
    def dconv(ch): return {"dconv": init_conv3(pg, ch, ch)}
    def up(ch): return {"up": init_conv3(pg, ch, ch)}

    p = {"time_embed": (init_linear(pg, MODEL_CH, TIME_DIM),
                        init_linear(pg, TIME_DIM, TIME_DIM))}
    p["input_blocks"] = [
        [conv(IN_CH, c1)],
        [res(c1, c1), st(c1)],
        [res(c1, c1), st(c1)],
        [dconv(c1)],
        [res(c1, c2), st(c2)],
        [res(c2, c2), st(c2)],
        [dconv(c2)],
        [res(c2, c3), st(c3)],
        [res(c3, c3), st(c3)],
        [dconv(c3)],
        [res(c3, c3)],
        [res(c3, c3)],
    ]
    p["middle"] = [res(c3, c3), st(c3), res(c3, c3)]
    p["output_blocks"] = [
        [res(2 * c3, c3)],
        [res(2 * c3, c3)],
        [res(2 * c3, c3), up(c3)],
        [res(2 * c3, c3), st(c3)],
        [res(2 * c3, c3), st(c3)],
        [res(c3 + c2, c3), st(c3), up(c3)],
        [res(c3 + c2, c2), st(c2)],
        [res(2 * c2, c2), st(c2)],
        [res(c2 + c1, c2), st(c2), up(c2)],
        [res(c2 + c1, c1), st(c1)],
        [res(2 * c1, c1), st(c1)],
        [res(2 * c1, c1), st(c1)],
    ]
    p["out"] = {"gn": init_norm(c1), "conv": init_conv3(pg, c1, OUT_CH)}  # zero_module in torch
    return p


# ---------------------------------------------------------------------------
# forward pass
# ---------------------------------------------------------------------------
def timestep_embedding(t, dim, max_period=10000):
    half = dim // 2
    freqs = jnp.exp(-math.log(max_period) *
                    jnp.arange(half, dtype=jnp.float32) / half)
    args = t[:, None].astype(jnp.float32) * freqs[None]
    return jnp.concatenate([jnp.cos(args), jnp.sin(args)], axis=-1)


def resblock_fwd(p, x, emb_silu):
    B, H, W, Cin = x.shape
    Cout = p["conv1"]["w"].shape[-1]
    h = groupnorm(x.reshape(B, H * W, Cin), p["gn1"], act="silu").reshape(B, H, W, Cin)
    t = pallas_matmul(emb_silu, p["emb"]["w"], p["emb"]["b"])          # (B, Cout)
    h = conv3x3(h, p["conv1"]["w"], p["conv1"]["b"], chadd=t)          # conv + time-emb add
    h = groupnorm(h.reshape(B, H * W, Cout), p["gn2"], act="silu").reshape(B, H, W, Cout)
    skip = x if p["skip"] is None else conv1x1(x, p["skip"])
    return conv3x3(h, p["conv2"]["w"], p["conv2"]["b"], residual=skip)  # conv + skip add


def attention_fwd(p, x, context=None, residual=None):
    B, L, Cq = x.shape
    ctx = x if context is None else context
    Lk, Ck = ctx.shape[1], ctx.shape[2]
    inner = p["wq"].shape[1]
    d_head = inner // N_HEADS
    q = pallas_matmul(x.reshape(B * L, Cq), p["wq"]).reshape(B, L, inner)
    k = pallas_matmul(ctx.reshape(B * Lk, Ck), p["wk"]).reshape(B, Lk, inner)
    v = pallas_matmul(ctx.reshape(B * Lk, Ck), p["wv"]).reshape(B, Lk, inner)
    o = flash_attention(q, k, v, N_HEADS, float(d_head) ** -0.5)
    res = None if residual is None else residual.reshape(B * L, Cq)
    o = pallas_matmul(o.reshape(B * L, inner), p["wo"], p["bo"], residual=res)
    return o.reshape(B, L, Cq)


def ff_fwd(p, x, residual=None):
    B, L, C = x.shape
    h = pallas_geglu(x.reshape(B * L, C), p["ff_wa"], p["ff_wg"],
                     p["ff_ba"], p["ff_bg"])                 # fused a*gelu(gate)
    res = None if residual is None else residual.reshape(B * L, C)
    h = pallas_matmul(h, p["ff_out"]["w"], p["ff_out"]["b"], residual=res)
    return h.reshape(B, L, C)


def basic_block_fwd(p, x, context):
    x = attention_fwd(p["attn1"], layernorm(x, p["norm1"]), None, residual=x)
    x = attention_fwd(p["attn2"], layernorm(x, p["norm2"]), context, residual=x)
    x = ff_fwd(p, layernorm(x, p["norm3"]), residual=x)
    return x


def spatial_transformer_fwd(p, x, context):
    B, H, W, C = x.shape
    x_in = x
    h = groupnorm(x.reshape(B, H * W, C), p["gn"])
    inner = p["proj_in"]["w"].shape[1]
    h = pallas_matmul(h.reshape(B * H * W, C), p["proj_in"]["w"], p["proj_in"]["b"])
    h = h.reshape(B, H * W, inner)
    for blk in p["blocks"]:
        h = basic_block_fwd(blk, h, context)
    y = pallas_matmul(h.reshape(B * H * W, inner), p["proj_out"]["w"],
                      p["proj_out"]["b"], residual=x_in.reshape(B * H * W, C))
    return y.reshape(B, H, W, C)


def upsample_fwd(p, x):
    # TODO(synk): fuse the nearest-neighbour 2x upsample into the conv3x3
    # staging copy instead of materializing the 4x activation via jnp.repeat.
    x = jnp.repeat(jnp.repeat(x, 2, axis=1), 2, axis=2)
    return conv3x3(x, p["w"], p["b"])


# Block-level jit: XLA fuses the glue (reshapes / transposes / casts) around
# the Pallas kernels and executables are reused across the ~50 repeated blocks.
_apply_res = jax.jit(resblock_fwd)
_apply_st = jax.jit(spatial_transformer_fwd)
_apply_conv = jax.jit(lambda lp, x: conv3x3(x, lp["w"], lp["b"]))
_apply_dconv = jax.jit(lambda lp, x: conv3x3(x, lp["w"], lp["b"], stride=2))
_apply_up = jax.jit(upsample_fwd)


@jax.jit
def _apply_head(tp, latent_nchw, time):
    x = jnp.transpose(latent_nchw, (0, 2, 3, 1)).astype(ACT_DT)   # NCHW -> NHWC
    t_emb = timestep_embedding(time, MODEL_CH)
    te0, te1 = tp
    emb = pallas_matmul(t_emb, te0["w"], te0["b"], act="silu")
    emb = pallas_matmul(emb, te1["w"], te1["b"])
    e32 = emb.astype(jnp.float32)
    return x, (e32 * jax.nn.sigmoid(e32)).astype(ACT_DT)           # shared SiLU(emb)


@jax.jit
def _apply_tail(op, x):
    B, H, W, C = x.shape
    h = groupnorm(x.reshape(B, H * W, C), op["gn"], act="silu").reshape(B, H, W, C)
    y = conv3x3(h, op["conv"]["w"], op["conv"]["b"])
    return jnp.transpose(y.astype(jnp.float32), (0, 3, 1, 2))      # NHWC -> NCHW


def run_block(layers, x, context, emb_silu):
    for layer in layers:
        (tag, lp), = layer.items()
        if tag == "res":
            x = _apply_res(lp, x, emb_silu)
        elif tag == "st":
            x = _apply_st(lp, x, context)
        elif tag == "conv":
            x = _apply_conv(lp, x)
        elif tag == "dconv":
            x = _apply_dconv(lp, x)
        elif tag == "up":
            x = _apply_up(lp, x)
    return x


def unet_forward(params, latent_nchw, context, time):
    context = context.astype(ACT_DT)
    x, emb_silu = _apply_head(params["time_embed"], latent_nchw, time)

    skips = []
    for block in params["input_blocks"]:
        x = run_block(block, x, context, emb_silu)
        skips.append(x)
    x = run_block(params["middle"], x, context, emb_silu)
    for block in params["output_blocks"]:
        x = jnp.concatenate([x, skips.pop()], axis=-1)       # torch cat((x, skip), dim=1)
        x = run_block(block, x, context, emb_silu)

    return _apply_tail(params["out"], x)


# ---------------------------------------------------------------------------
if __name__ == "__main__":
    key = jax.random.PRNGKey(0)
    kp, kl, kc = jax.random.split(key, 3)

    params = init_unet(ParamGen(kp))

    latent = jax.random.normal(kl, (2, IN_CH, 16, 16), dtype=jnp.float32)   # NCHW like torch
    context = jax.random.normal(kc, (2, 8, CONTEXT_DIM), dtype=jnp.float32)
    time = jnp.array([1.0, 500.0], dtype=jnp.float32)

    out = unet_forward(params, latent, context, time)
    out = jax.block_until_ready(out)

    assert out.shape == (2, OUT_CH, 16, 16), out.shape
    assert bool(jnp.all(jnp.isfinite(out)))
    print("KERNEL_OK")
</pallas_src>

<mosaic_0001>
module attributes {stable_mosaic.version = 11 : i64} {
  func.func @_matmul_kernel(%arg0: i32, %arg1: i32, %arg2: i32, %arg3: memref<2x32xbf16, #tpu.memory_space<vmem>>, %arg4: memref<32x128xbf16, #tpu.memory_space<vmem>>, %arg5: memref<1x128xf32, #tpu.memory_space<vmem>>, %arg6: memref<2x128xbf16, #tpu.memory_space<vmem>>, %arg7: memref<2x128xf32, #tpu.memory_space<vmem>>) attributes {dimension_semantics = [#tpu.dimension_semantics<parallel>, #tpu.dimension_semantics<parallel>, #tpu.dimension_semantics<arbitrary>], iteration_bounds = array<i64: 1, 1, 1>, scalar_prefetch = 0 : i64, scratch_operands = 1 : i64, tpu.core_type = #tpu.core_type<tc>, window_params = [{transform_indices = @transform_0, window_bounds = array<i64: 2, 32>}, {transform_indices = @transform_1, window_bounds = array<i64: 32, 128>}, {transform_indices = @transform_2, window_bounds = array<i64: 1, 128>}, {transform_indices = @transform_3, window_bounds = array<i64: 2, 128>}]} {
    %c0_i32 = arith.constant 0 : i32
    %0 = arith.cmpi eq, %arg2, %c0_i32 : i32
    %1 = arith.extui %0 : i1 to i32
    %c0_i32_0 = arith.constant 0 : i32
    %2 = arith.cmpi ne, %1, %c0_i32_0 : i32
    scf.if %2 {
      %cst_10 = arith.constant 0.000000e+00 : f32
      %12 = vector.broadcast %cst_10 : f32 to vector<2x128xf32>
      %c0_11 = arith.constant 0 : index
      %c0_12 = arith.constant 0 : index
      %13 = vector.load %arg7[%c0_11, %c0_12] : memref<2x128xf32, #tpu.memory_space<vmem>>, vector<2x128xf32>
      tpu.vector_store %arg7[%c0_11, %c0_12], %12 {strides = array<i32>} : memref<2x128xf32, #tpu.memory_space<vmem>>, vector<2x128xf32>,
    } else {
    }
    %c0 = arith.constant 0 : index
    %c0_1 = arith.constant 0 : index
    %3 = vector.load %arg7[%c0, %c0_1] : memref<2x128xf32, #tpu.memory_space<vmem>>, vector<2x128xf32>
    %c0_2 = arith.constant 0 : index
    %c0_3 = arith.constant 0 : index
    %4 = vector.load %arg3[%c0_2, %c0_3] : memref<2x32xbf16, #tpu.memory_space<vmem>>, vector<2x32xbf16>
    %c0_4 = arith.constant 0 : index
    %c0_5 = arith.constant 0 : index
    %5 = vector.load %arg4[%c0_4, %c0_5] : memref<32x128xbf16, #tpu.memory_space<vmem>>, vector<32x128xbf16>
    %cst = arith.constant dense<0.000000e+00> : vector<2x128xf32>
    %6 = tpu.matmul %4, %5, %cst {dimension_numbers = #tpu.dot_dimension_numbers<[1], [0], [0], [1], [0, 0, 1, 1], [], []>} : vector<2x32xbf16>, vector<32x128xbf16>, vector<2x128xf32> -> vector<2x128xf32>
    %7 = arith.addf %3, %6 : vector<2x128xf32>
    %c0_6 = arith.constant 0 : index
    %c0_7 = arith.constant 0 : index
    %8 = vector.load %arg7[%c0_6, %c0_7] : memref<2x128xf32, #tpu.memory_space<vmem>>, vector<2x128xf32>
    tpu.vector_store %arg7[%c0_6, %c0_7], %7 {strides = array<i32>} : memref<2x128xf32, #tpu.memory_space<vmem>>, vector<2x128xf32>,
    %c0_i32_8 = arith.constant 0 : i32
    %9 = arith.cmpi eq, %arg2, %c0_i32_8 : i32
    %10 = arith.extui %9 : i1 to i32
    %c0_i32_9 = arith.constant 0 : i32
    %11 = arith.cmpi ne, %10, %c0_i32_9 : i32
    scf.if %11 {
      %c0_10 = arith.constant 0 : index
      %c0_11 = arith.constant 0 : index
      %12 = vector.load %arg7[%c0_10, %c0_11] : memref<2x128xf32, #tpu.memory_space<vmem>>, vector<2x128xf32>
      %c0_12 = arith.constant 0 : index
      %c0_13 = arith.constant 0 : index
      %13 = vector.load %arg5[%c0_12, %c0_13] : memref<1x128xf32, #tpu.memory_space<vmem>>, vector<1x128xf32>
      %14 = vector.broadcast %13 : vector<1x128xf32> to vector<2x128xf32>
      %15 = arith.addf %12, %14 : vector<2x128xf32>
      %16 = arith.negf %15 : vector<2x128xf32>
      %17 = math.exp %16 : vector<2x128xf32>
      %cst_14 = arith.constant 1.000000e+00 : f32
      %18 = vector.broadcast %cst_14 : f32 to vector<2x128xf32>
      %19 = arith.addf %18, %17 : vector<2x128xf32>
      %20 = arith.divf %18, %19 : vector<2x128xf32>
      %21 = arith.mulf %15, %20 : vector<2x128xf32>
      %22 = arith.truncf %21 : vector<2x128xf32> to vector<2x128xbf16>
      %c0_15 = arith.constant 0 : index
      %c0_16 = arith.constant 0 : index
      %23 = vector.load %arg6[%c0_15, %c0_16] : memref<2x128xbf16, #tpu.memory_space<vmem>>, vector<2x128xbf16>
      tpu.vector_store %arg6[%c0_15, %c0_16], %22 {strides = array<i32>} : memref<2x128xbf16, #tpu.memory_space<vmem>>, vector<2x128xbf16>,
    } else {
    }
    return
  }
  func.func @transform_0(%arg0: i32, %arg1: i32, %arg2: i32) -> (i32, i32) {
    %c0_i32 = arith.constant 0 : i32
    return %arg0, %arg2 : i32, i32
  }
  func.func @transform_1(%arg0: i32, %arg1: i32, %arg2: i32) -> (i32, i32) {
    %c0_i32 = arith.constant 0 : i32
    return %arg2, %arg1 : i32, i32
  }
  func.func @transform_2(%arg0: i32, %arg1: i32, %arg2: i32) -> (i32, i32) {
    %c0_i32 = arith.constant 0 : i32
    %c0_i32_0 = arith.constant 0 : i32
    return %c0_i32, %arg1 : i32, i32
  }
  func.func @transform_3(%arg0: i32, %arg1: i32, %arg2: i32) -> (i32, i32) {
    %c0_i32 = arith.constant 0 : i32
    return %arg0, %arg1 : i32, i32
  }
}

module attributes {stable_mosaic.version = 11 : i64} {
  func.func @_matmul_kernel(%arg0: i32, %arg1: i32, %arg2: i32, %arg3: memref<2x128xbf16, #tpu.memory_space<vmem>>, %arg4: memref<128x128xbf16, #tpu.memory_space<vmem>>, %arg5: memref<1x128xf32, #tpu.memory_space<vmem>>, %arg6: memref<2x128xbf16, #tpu.memory_space<vmem>>, %arg7: memref<2x128xf32, #tpu.memory_space<vmem>>) attributes {dimension_semantics = [#tpu.dimension_semantics<parallel>, #tpu.dimension_semantics<parallel>, #tpu.dimension_semantics<arbitrary>], iteration_bounds = array<i64: 1, 1, 1>, scalar_prefetch = 0 : i64, scratch_operands = 1 : i64, tpu.core_type = #tpu.core_type<tc>, window_params = [{transform_indices = @transform_0, window_bounds = array<i64: 2, 128>}, {transform_indices = @transform_1, window_bounds = array<i64: 128, 128>}, {transform_indices = @transform_2, window_bounds = array<i64: 1, 128>}, {transform_indices = @transform_3, window_bounds = array<i64: 2, 128>}]} {
    %c0_i32 = arith.constant 0 : i32
    %0 = arith.cmpi eq, %arg2, %c0_i32 : i32
    %1 = arith.extui %0 : i1 to i32
    %c0_i32_0 = arith.constant 0 : i32
    %2 = arith.cmpi ne, %1, %c0_i32_0 : i32
    scf.if %2 {
      %cst_10 = arith.constant 0.000000e+00 : f32
      %12 = vector.broadcast %cst_10 : f32 to vector<2x128xf32>
      %c0_11 = arith.constant 0 : index
      %c0_12 = arith.constant 0 : index
      %13 = vector.load %arg7[%c0_11, %c0_12] : memref<2x128xf32, #tpu.memory_space<vmem>>, vector<2x128xf32>
      tpu.vector_store %arg7[%c0_11, %c0_12], %12 {strides = array<i32>} : memref<2x128xf32, #tpu.memory_space<vmem>>, vector<2x128xf32>,
    } else {
    }
    %c0 = arith.constant 0 : index
    %c0_1 = arith.constant 0 : index
    %3 = vector.load %arg7[%c0, %c0_1] : memref<2x128xf32, #tpu.memory_space<vmem>>, vector<2x128xf32>
    %c0_2 = arith.constant 0 : index
    %c0_3 = arith.constant 0 : index
    %4 = vector.load %arg3[%c0_2, %c0_3] : memref<2x128xbf16, #tpu.memory_space<vmem>>, vector<2x128xbf16>
    %c0_4 = arith.constant 0 : index
    %c0_5 = arith.constant 0 : index
    %5 = vector.load %arg4[%c0_4, %c0_5] : memref<128x128xbf16, #tpu.memory_space<vmem>>, vector<128x128xbf16>
    %cst = arith.constant dense<0.000000e+00> : vector<2x128xf32>
    %6 = tpu.matmul %4, %5, %cst {dimension_numbers = #tpu.dot_dimension_numbers<[1], [0], [0], [1], [0, 0, 1, 1], [], []>} : vector<2x128xbf16>, vector<128x128xbf16>, vector<2x128xf32> -> vector<2x128xf32>
    %7 = arith.addf %3, %6 : vector<2x128xf32>
    %c0_6 = arith.constant 0 : index
    %c0_7 = arith.constant 0 : index
    %8 = vector.load %arg7[%c0_6, %c0_7] : memref<2x128xf32, #tpu.memory_space<vmem>>, vector<2x128xf32>
    tpu.vector_store %arg7[%c0_6, %c0_7], %7 {strides = array<i32>} : memref<2x128xf32, #tpu.memory_space<vmem>>, vector<2x128xf32>,
    %c0_i32_8 = arith.constant 0 : i32
    %9 = arith.cmpi eq, %arg2, %c0_i32_8 : i32
    %10 = arith.extui %9 : i1 to i32
    %c0_i32_9 = arith.constant 0 : i32
    %11 = arith.cmpi ne, %10, %c0_i32_9 : i32
    scf.if %11 {
      %c0_10 = arith.constant 0 : index
      %c0_11 = arith.constant 0 : index
      %12 = vector.load %arg7[%c0_10, %c0_11] : memref<2x128xf32, #tpu.memory_space<vmem>>, vector<2x128xf32>
      %c0_12 = arith.constant 0 : index
      %c0_13 = arith.constant 0 : index
      %13 = vector.load %arg5[%c0_12, %c0_13] : memref<1x128xf32, #tpu.memory_space<vmem>>, vector<1x128xf32>
      %14 = vector.broadcast %13 : vector<1x128xf32> to vector<2x128xf32>
      %15 = arith.addf %12, %14 : vector<2x128xf32>
      %16 = arith.truncf %15 : vector<2x128xf32> to vector<2x128xbf16>
      %c0_14 = arith.constant 0 : index
      %c0_15 = arith.constant 0 : index
      %17 = vector.load %arg6[%c0_14, %c0_15] : memref<2x128xbf16, #tpu.memory_space<vmem>>, vector<2x128xbf16>
      tpu.vector_store %arg6[%c0_14, %c0_15], %16 {strides = array<i32>} : memref<2x128xbf16, #tpu.memory_space<vmem>>, vector<2x128xbf16>,
    } else {
    }
    return
  }
  func.func @transform_0(%arg0: i32, %arg1: i32, %arg2: i32) -> (i32, i32) {
    %c0_i32 = arith.constant 0 : i32
    return %arg0, %arg2 : i32, i32
  }
  func.func @transform_1(%arg0: i32, %arg1: i32, %arg2: i32) -> (i32, i32) {
    %c0_i32 = arith.constant 0 : i32
    return %arg2, %arg1 : i32, i32
  }
  func.func @transform_2(%arg0: i32, %arg1: i32, %arg2: i32) -> (i32, i32) {
    %c0_i32 = arith.constant 0 : i32
    %c0_i32_0 = arith.constant 0 : i32
    return %c0_i32, %arg1 : i32, i32
  }
  func.func @transform_3(%arg0: i32, %arg1: i32, %arg2: i32) -> (i32, i32) {
    %c0_i32 = arith.constant 0 : i32
    return %arg0, %arg1 : i32, i32
  }
}

</mosaic_0001>

<bundles_post_ra>
// kernel: _apply_head.3
= control target key start
LH: loop header
LB: loop body
LE: loop exit
PB: predicated region body
PF: predicated region fallthrough
CT: control target
= control target key end

     0   :  { %8 = vsyncpa [#allocation4], 0  ;;  %s330_s0 = inlined_call_operand.vmem [shape: bf16[2,128], index: 0, kind: input, shape index: {}]   ;;  %s331_s1 = inlined_call_operand.hbm [shape: bf16[128,128], index: 1, kind: input, shape index: {}]   ;;  %s332_s2 = inlined_call_operand.hbm [shape: f32[1,128], index: 2, kind: input, shape index: {}]   ;;  %s333_s3 = inlined_call_operand.vmem [shape: bf16[2,128], index: 3, kind: output, shape index: {}]  }
   0x1   :  { %9 = vsyncpa [#allocation6], 0  ;;  %s274_s12 = smov [#allocation3]   ;;  %s226_s16 = scalar_lea.hbm %s331_s1, 1024 }
   0x2   :  { %s17_s13 = sshll.u32 %s274_s12, 4  ;;  %p227_p0 = scmp.ne.s32.totalorder %s331_s1, %s226_s16  ;;  %s18_s13 = int_to_ptr.vmem [resolvable:$true] %s17_s13 }
   0x3   :  { %p230_p1 = scmp.lt.u32.totalorder %s226_s16, %s331_s1 }
   0x5   :  { %p232_p2 = pnand %p230_p1, %p227_p0 }
   0x7   :  { %235 = shalt.err (!%p232_p2)
}
   0x8   :  { %s236_s21 = scalar_lea.vmem %s18_s13, 1024  ;;  %p241_p4 = scmp.lt.s32.totalorder %s18_s13, %s18_s13 }
   0x9   :  { %p237_p3 = scmp.ne.s32.totalorder %s18_s13, %s236_s21  ;;  %p242_p5 = scmp.lt.s32.totalorder %s236_s21, %s236_s21 }
   0xb   :  { %p243_p6 = por %p242_p5, %p241_p4 }
   0xd   :  { %p244_p7 = pnand %p243_p6, %p237_p3 }
   0xf   :  { %247 = shalt.err (!%p244_p7)
}
  0x10   :  { %s275_s22 = smov 64   ;;  %s276_s23 = smov 4  }
  0x11   :  { %23 = dma.hbm_to_vmem [thread:$0]  %s331_s1, 1024, %s18_s13, [#allocation4], %s275_s22, %s275_s22, %s276_s23  }
  0x12   :  { %s277_s26 = smov [#allocation5]   ;;  %s248_s30 = scalar_lea.hbm %s332_s2, 16 }
  0x13   :  { %s30_s27 = sshll.u32 %s277_s26, 4  ;;  %p249_p8 = scmp.ne.s32.totalorder %s332_s2, %s248_s30  ;;  %s31_s27 = int_to_ptr.vmem [resolvable:$true] %s30_s27 }
  0x14   :  { %p252_p9 = scmp.lt.u32.totalorder %s248_s30, %s332_s2 }
  0x16   :  { %p254_p10 = pnand %p252_p9, %p249_p8 }
  0x18   :  { %257 = shalt.err (!%p254_p10)
}
  0x19   :  { %s258_s8 = scalar_lea.vmem %s31_s27, 16  ;;  %s262_s1 = scalar_lea.vmem %s31_s27, 32 }
  0x1a   :  { %p259_p11 = scmp.ne.s32.totalorder %s31_s27, %s258_s8  ;;  %p263_p12 = scmp.lt.s32.totalorder %s31_s27, %s31_s27 }
  0x1b   :  { %p264_p13 = scmp.lt.s32.totalorder %s262_s1, %s258_s8 }
  0x1d   :  { %p265_p0 = por %p264_p13, %p263_p12 }
  0x1f   :  { %p266_p1 = pnand %p265_p0, %p259_p11 }
  0x21   :  { %269 = shalt.err (!%p266_p1)
}
  0x22   :  { %33 = dma.hbm_to_vmem [thread:$0]  %s332_s2, 16, %s31_s27, [#allocation6]  }
  0x23   :  { %270 = dma.done.wait [#allocation4], 1024  }
  0x24   :  { %271 = vsyncadd [#allocation4], 4294966272 }
  0x25   :  { %272 = dma.done.wait [#allocation6], 16  }
  0x26   :  { %273 = vsyncadd [#allocation6], 4294967280  ;;  %v278_v0 = vmov 0.0   ;;  %vm279_vm0 = vmmov 0   ;;  %v218_v1 = vld [vmem:[#allocation3] sm:$0xff]   ;;  %v219_v2 = vld [vmem:[#allocation3 + $0x8] sm:$0xff]  }
  0x27   :  { %192 = vmatprep.subr.bf16.mxu0 %v278_v0  ;;  %45 = vst [vmem:[#allocation2] sm:$0x3] %v278_v0  ;;  %208 = vmatprep.mubr.msk.bf16.mxu0 %vm279_vm0, %v278_v0  ;;  %v220_v3 = vld [vmem:[#allocation3 + $0x10] sm:$0xff]   ;;  %v221_v4 = vld [vmem:[#allocation3 + $0x18] sm:$0xff]   ;;  %v222_v5 = vld [vmem:[#allocation3 + $0x20] sm:$0xff]  }
  0x28   :  { %193 = vmatpush3.bf16.msra.mxu0 %v218_v1  ;;  %v223_v6 = vld [vmem:[#allocation3 + $0x28] sm:$0xff]   ;;  %v224_v7 = vld [vmem:[#allocation3 + $0x30] sm:$0xff]   ;;  %v225_v8 = vld [vmem:[#allocation3 + $0x38] sm:$0xff]  }
  0x29   :  { %194 = vmatprep.subr.bf16.mxu0 %v278_v0  ;;  %v47_v9 = vld [vmem:[%s330_s0] sm:$0x1]  ;;  %v182_v16 = vld [vmem:[#allocation5] ss:$0 sm:$0xff] }
  0x2c   :  { %195 = vmatpush3.bf16.msra.mxu0 %v219_v2 }
  0x2d   :  { %196 = vmatprep.subr.bf16.mxu0 %v278_v0 }
  0x2e   :  { %v46_v10 = vld [vmem:[#allocation2] sm:$0x3] }
  0x30   :  { %197 = vmatpush3.bf16.msra.mxu0 %v220_v3 }
  0x31   :  { %198 = vmatprep.subr.bf16.mxu0 %v278_v0 }
  0x34   :  { %199 = vmatpush3.bf16.msra.mxu0 %v221_v4 }
  0x35   :  { %200 = vmatprep.subr.bf16.mxu0 %v278_v0 }
  0x38   :  { %201 = vmatpush3.bf16.msra.mxu0 %v222_v5 }
  0x39   :  { %202 = vmatprep.subr.bf16.mxu0 %v278_v0 }
  0x3c   :  { %203 = vmatpush3.bf16.msra.mxu0 %v223_v6 }
  0x3d   :  { %204 = vmatprep.subr.bf16.mxu0 %v278_v0 }
  0x40   :  { %205 = vmatpush3.bf16.msra.mxu0 %v224_v7 }
  0x41   :  { %206 = vmatprep.subr.bf16.mxu0 %v278_v0 }
  0x44   :  { %207 = vmatpush3.bf16.msra.mxu0 %v225_v8 }
  0x47   :  { %209 = vmatmul.mubr.bf16.vlgmr.msra.gmra.mrb[0].mxu0 %v47_v9 }
 0x11a   :  { %v146_v11 = vpop.f32.mrb[0].mxu0 }
 0x11b   :  { %v152_v12 = vadd.f32 %v146_v11, %v46_v10  ;;  %v210_v13 = vpop.f32.mrb[1].mxu0 }
 0x11c   :  { %v149_v14 = vpop.f32.mrb[2].mxu0 }
 0x11d   :  { %153 = vst [vmem:[#allocation2] sm:$0x3] %v152_v12  ;;  %v211_v15 = vpop.f32.mrb[3].mxu0 }
 0x124   :  { %v157_v17 = vld [vmem:[#allocation2] sm:$0x3] }
 0x125   :  { %v165_v18 = vadd.f32 %v182_v16, %v157_v17 }
 0x127   :  { %v166_v19 = vpack.c.bf16 %v165_v18, %v165_v18 }
 0x129   :  { %167 = vst [vmem:[%s333_s3] sm:$0x1] %v166_v19 }
 0x12a   :  { %172 = vsyncpa [#allocation4], 1 }
 0x12b   :  { %173 = vsyncpa [#allocation6], 1 }

// kernel: _apply_head.2
= control target key start
LH: loop header
LB: loop body
LE: loop exit
PB: predicated region body
PF: predicated region fallthrough
CT: control target
= control target key end

     0   :  { %8 = vsyncpa [#allocation4], 0  ;;  %s269_s0 = inlined_call_operand.vmem [shape: bf16[2,32], index: 0, kind: input, shape index: {}]   ;;  %s270_s1 = inlined_call_operand.hbm [shape: bf16[32,128], index: 1, kind: input, shape index: {}]   ;;  %s271_s2 = inlined_call_operand.hbm [shape: f32[1,128], index: 2, kind: input, shape index: {}]   ;;  %s272_s3 = inlined_call_operand.vmem [shape: bf16[2,128], index: 3, kind: output, shape index: {}]  }
   0x1   :  { %9 = vsyncpa [#allocation6], 0  ;;  %s213_s12 = smov [#allocation3]   ;;  %s165_s16 = scalar_lea.hbm %s270_s1, 256 }
   0x2   :  { %s17_s13 = sshll.u32 %s213_s12, 4  ;;  %p166_p0 = scmp.ne.s32.totalorder %s270_s1, %s165_s16  ;;  %s18_s13 = int_to_ptr.vmem [resolvable:$true] %s17_s13 }
   0x3   :  { %p169_p1 = scmp.lt.u32.totalorder %s165_s16, %s270_s1 }
   0x5   :  { %p171_p2 = pnand %p169_p1, %p166_p0 }
   0x7   :  { %174 = shalt.err (!%p171_p2)
}
   0x8   :  { %s175_s21 = scalar_lea.vmem %s18_s13, 256  ;;  %p180_p4 = scmp.lt.s32.totalorder %s18_s13, %s18_s13 }
   0x9   :  { %p176_p3 = scmp.ne.s32.totalorder %s18_s13, %s175_s21  ;;  %p181_p5 = scmp.lt.s32.totalorder %s175_s21, %s175_s21 }
   0xb   :  { %p182_p6 = por %p181_p5, %p180_p4 }
   0xd   :  { %p183_p7 = pnand %p182_p6, %p176_p3 }
   0xf   :  { %186 = shalt.err (!%p183_p7)
}
  0x10   :  { %s214_s22 = smov 64   ;;  %s215_s23 = smov 4  }
  0x11   :  { %23 = dma.hbm_to_vmem [thread:$0]  %s270_s1, 256, %s18_s13, [#allocation4], %s214_s22, %s214_s22, %s215_s23  }
  0x12   :  { %s216_s26 = smov [#allocation5]   ;;  %s187_s30 = scalar_lea.hbm %s271_s2, 16 }
  0x13   :  { %s30_s27 = sshll.u32 %s216_s26, 4  ;;  %p188_p8 = scmp.ne.s32.totalorder %s271_s2, %s187_s30  ;;  %s31_s27 = int_to_ptr.vmem [resolvable:$true] %s30_s27 }
  0x14   :  { %p191_p9 = scmp.lt.u32.totalorder %s187_s30, %s271_s2 }
  0x16   :  { %p193_p10 = pnand %p191_p9, %p188_p8 }
  0x18   :  { %196 = shalt.err (!%p193_p10)
}
  0x19   :  { %s197_s8 = scalar_lea.vmem %s31_s27, 16  ;;  %s201_s1 = scalar_lea.vmem %s31_s27, 32 }
  0x1a   :  { %p198_p11 = scmp.ne.s32.totalorder %s31_s27, %s197_s8  ;;  %p202_p12 = scmp.lt.s32.totalorder %s31_s27, %s31_s27 }
  0x1b   :  { %p203_p13 = scmp.lt.s32.totalorder %s201_s1, %s197_s8 }
  0x1d   :  { %p204_p0 = por %p203_p13, %p202_p12 }
  0x1f   :  { %p205_p1 = pnand %p204_p0, %p198_p11 }
  0x21   :  { %208 = shalt.err (!%p205_p1)
}
  0x22   :  { %33 = dma.hbm_to_vmem [thread:$0]  %s271_s2, 16, %s31_s27, [#allocation6]  }
  0x23   :  { %209 = dma.done.wait [#allocation4], 256  }
  0x24   :  { %210 = vsyncadd [#allocation4], 4294967040 }
  0x25   :  { %211 = dma.done.wait [#allocation6], 16  }
  0x26   :  { %212 = vsyncadd [#allocation6], 4294967280  ;;  %v217_v0 = vmov 0.0   ;;  %vm218_vm0 = vmmov 0   ;;  %v159_v1 = vld [vmem:[#allocation3] sm:$0xff]   ;;  %v160_v2 = vld [vmem:[#allocation3 + $0x8] sm:$0xff]  }
  0x27   :  { %45 = vst [vmem:[#allocation2] sm:$0x3] %v217_v0  ;;  %145 = vmatprep.subr.bf16.mxu0 %v217_v0  ;;  %149 = vmatprep.mubr.msk.bf16.mxu0 %vm218_vm0, %v217_v0  ;;  %v47_v3 = vld [vmem:[%s269_s0] sm:$0x1]  ;;  %vm64_vm1 = vcmask 261120  }
  0x28   :  { %146 = vmatpush3.bf16.msra.mxu0 %v159_v1  ;;  %v140_v10 = vld [vmem:[#allocation5] ss:$0 sm:$0xff] }
  0x29   :  { %147 = vmatprep.subr.bf16.mxu0 %v217_v0 }
  0x2c   :  { %148 = vmatpush3.bf16.msra.mxu0 %v160_v2 }
  0x2e   :  { %v46_v4 = vld [vmem:[#allocation2] sm:$0x3] }
  0x2f   :  { %150 = vmatmul.mubr.msk.bf16.vlgmr.msra.gmra.mrb[0].mxu0 %vm64_vm1, %v47_v3 }
 0x102   :  { %v102_v5 = vpop.f32.mrb[0].mxu0 }
 0x103   :  { %v108_v6 = vadd.f32 %v102_v5, %v46_v4  ;;  %v151_v7 = vpop.f32.mrb[1].mxu0 }
 0x104   :  { %v105_v8 = vpop.f32.mrb[2].mxu0 }
 0x105   :  { %109 = vst [vmem:[#allocation2] sm:$0x3] %v108_v6  ;;  %v152_v9 = vpop.f32.mrb[3].mxu0 }
 0x10c   :  { %v113_v11 = vld [vmem:[#allocation2] sm:$0x3] }
 0x10d   :  { %v121_v12 = vadd.f32 %v140_v10, %v113_v11 }
 0x10f   :  { %v141_v13 = vmul.f32 -1.442695, %v121_v12 }
 0x111   :  { %161 = vpow2.f32 %v141_v13 }
 0x11b   :  { %v162_v14 = vpop.eup %161 }
 0x11c   :  { %v125_v15 = vadd.f32 1.0, %v162_v14 }
 0x11e   :  { %163 = vrcp.f32 %v125_v15 }
 0x128   :  { %v164_v16 = vpop.eup %163 }
 0x129   :  { %v128_v17 = vmul.f32 %v164_v16, %v121_v12 }
 0x12b   :  { %v129_v18 = vpack.c.bf16 %v128_v17, %v128_v17 }
 0x12d   :  { %130 = vst [vmem:[%s272_s3] sm:$0x1] %v129_v18 }
 0x12e   :  { %135 = vsyncpa [#allocation4], 1 }
 0x12f   :  { %136 = vsyncpa [#allocation6], 1 }

</bundles_post_ra>
